<compile_context>
chip_gen: v6e
topology: v6e:2x2x1
jax: 0.10.0
libtpu: 0.0.40
codegen_flags: <defaults>
</compile_context>

<pallas_src>
import jax
import jax.numpy as jnp
import numpy as np
from jax import lax
from jax.experimental import pallas as pl
from jax.experimental.pallas import tpu as pltpu


def mlp_kernel(x_ref, w1_ref, w2_ref, o_ref):
    x = x_ref[...]

    # Hidden layer: x @ W1^T, expressed as dot_general contracting
    # x dim 1 with w1 dim 1 (w1 is (hidden, in) PyTorch layout) -> no transpose.
    h = lax.dot_general(
        x, w1_ref[...],
        dimension_numbers=(((1,), (1,)), ((), ())),
        preferred_element_type=jnp.float32,
    )

    # Sigmoid activation (lowers to the EUP logistic path).
    h = jax.nn.sigmoid(h)

    # Output layer: h @ W2^T, same contraction trick.
    out = lax.dot_general(
        h, w2_ref[...],
        dimension_numbers=(((1,), (1,)), ((), ())),
        preferred_element_type=jnp.float32,
    )
    o_ref[...] = out.astype(o_ref.dtype)


def mlp_forward(x, w1, w2):
    n, _ = x.shape
    f_out, _ = w2.shape
    # No grid: single kernel invocation, all operands fully VMEM-resident.
    return pl.pallas_call(
        mlp_kernel,
        out_shape=jax.ShapeDtypeStruct((n, f_out), x.dtype),
        in_specs=[
            pl.BlockSpec(memory_space=pltpu.MemorySpace.VMEM),
            pl.BlockSpec(memory_space=pltpu.MemorySpace.VMEM),
            pl.BlockSpec(memory_space=pltpu.MemorySpace.VMEM),
        ],
        out_specs=pl.BlockSpec(memory_space=pltpu.MemorySpace.VMEM),
    )(x, w1, w2)


def init_params(key):
    # Deterministic init mimicking nn.Linear default: U(-1/sqrt(fan_in), 1/sqrt(fan_in))
    k1, k2 = jax.random.split(key)
    bound = 1.0 / np.sqrt(2.0)
    w1 = jax.random.uniform(k1, (2, 2), jnp.float32, minval=-bound, maxval=bound)
    w2 = jax.random.uniform(k2, (2, 2), jnp.float32, minval=-bound, maxval=bound)
    return w1, w2


if __name__ == "__main__":
    key = jax.random.PRNGKey(0)
    w1, w2 = init_params(key)

    # Same input as the reference script: XOR truth-table inputs, shape (4, 2)
    x = jnp.array([(0, 0), (0, 1), (1, 0), (1, 1)], dtype=jnp.float32)

    out = mlp_forward(x, w1, w2)
    out = jax.block_until_ready(out)

    # Cross-check against pure-JAX reference of the same math.
    ref = jax.nn.sigmoid(x @ w1.T) @ w2.T
    np.testing.assert_allclose(np.asarray(out), np.asarray(ref), rtol=1e-5, atol=1e-5)

    print("KERNEL_OK")
</pallas_src>

<mosaic_0001>
module attributes {stable_mosaic.version = 11 : i64} {
  func.func @mlp_kernel(%arg0: memref<4x2xf32, #tpu.memory_space<vmem>>, %arg1: memref<2x2xf32, #tpu.memory_space<vmem>>, %arg2: memref<2x2xf32, #tpu.memory_space<vmem>>, %arg3: memref<4x2xf32, #tpu.memory_space<vmem>>) attributes {dimension_semantics = [], scalar_prefetch = 0 : i64, scratch_operands = 0 : i64, tpu.core_type = #tpu.core_type<tc>} {
    %c0 = arith.constant 0 : index
    %c0_0 = arith.constant 0 : index
    %0 = vector.load %arg0[%c0, %c0_0] : memref<4x2xf32, #tpu.memory_space<vmem>>, vector<4x2xf32>
    %c0_1 = arith.constant 0 : index
    %c0_2 = arith.constant 0 : index
    %1 = vector.load %arg1[%c0_1, %c0_2] : memref<2x2xf32, #tpu.memory_space<vmem>>, vector<2x2xf32>
    %cst = arith.constant dense<0.000000e+00> : vector<4x2xf32>
    %2 = tpu.matmul %0, %1, %cst {dimension_numbers = #tpu.dot_dimension_numbers<[1], [1], [0], [0], [0, 0, 1, 0], [], []>} : vector<4x2xf32>, vector<2x2xf32>, vector<4x2xf32> -> vector<4x2xf32>
    %3 = arith.negf %2 : vector<4x2xf32>
    %4 = math.exp %3 : vector<4x2xf32>
    %cst_3 = arith.constant 1.000000e+00 : f32
    %5 = vector.broadcast %cst_3 : f32 to vector<4x2xf32>
    %6 = arith.addf %5, %4 : vector<4x2xf32>
    %7 = arith.divf %5, %6 : vector<4x2xf32>
    %c0_4 = arith.constant 0 : index
    %c0_5 = arith.constant 0 : index
    %8 = vector.load %arg2[%c0_4, %c0_5] : memref<2x2xf32, #tpu.memory_space<vmem>>, vector<2x2xf32>
    %cst_6 = arith.constant dense<0.000000e+00> : vector<4x2xf32>
    %9 = tpu.matmul %7, %8, %cst_6 {dimension_numbers = #tpu.dot_dimension_numbers<[1], [1], [0], [0], [0, 0, 1, 0], [], []>} : vector<4x2xf32>, vector<2x2xf32>, vector<4x2xf32> -> vector<4x2xf32>
    %c0_7 = arith.constant 0 : index
    %c0_8 = arith.constant 0 : index
    %10 = vector.load %arg3[%c0_7, %c0_8] : memref<4x2xf32, #tpu.memory_space<vmem>>, vector<4x2xf32>
    tpu.vector_store %arg3[%c0_7, %c0_8], %9 {strides = array<i32>} : memref<4x2xf32, #tpu.memory_space<vmem>>, vector<4x2xf32>,
    return
  }
}

</mosaic_0001>

<bundles_post_ra>
// kernel: tpu_custom_call.1
= control target key start
LH: loop header
LB: loop body
LE: loop exit
PB: predicated region body
PF: predicated region fallthrough
CT: control target
= control target key end

     0   :  { %vm16_vm0 = vcmask 15360   ;;  %v207_v0 = vmov 0.0   ;;  %vm208_vm1 = vmmov 0   ;;  %vm176_vm2 = vcmask 11264   ;;  %s245_s1 = inlined_call_operand.vmem [shape: f32[2,2], index: 1, kind: input, shape index: {}]   ;;  %s246_s0 = inlined_call_operand.vmem [shape: f32[4,2], index: 0, kind: input, shape index: {}]   ;;  %s247_s2 = inlined_call_operand.vmem [shape: f32[2,2], index: 2, kind: input, shape index: {}]   ;;  %s248_s3 = inlined_call_operand.vmem [shape: f32[4,2], index: 3, kind: output, shape index: {}]  }
   0x1   :  { %191 = vmatprep.subr.mxu0 %v207_v0  ;;  %v15_v1 = vld [vmem:[%s245_s1] sm:$0x3]  ;;  %193 = vmatprep.mubr.msk.f32.mxu0 %vm208_vm1, %v207_v0 }
   0x2   :  { %192 = vmatpush3.xpose.msk.msra.mxu0 %vm16_vm0, %v15_v1  ;;  %v14_v2 = vld [vmem:[%s246_s0] sm:$0xf]  ;;  %196 = vmatprep.subr.mxu1 %v207_v0 }
   0x3   :  { %198 = vmatprep.mubr.msk.f32.mxu1 %vm208_vm1, %v207_v0  ;;  %v99_v3 = vld [vmem:[%s247_s2] sm:$0x3] }
   0x4   :  { %197 = vmatpush3.xpose.msk.msra.mxu1 %vm16_vm0, %v99_v3 }
   0x5   :  { %194 = vmatmul.mubr.msk.f32.vlgmr.msra.gmra.mxu0 %vm16_vm0, %v14_v2 }
  0xc5   :  { %v89_v4 = vpop.f32.mrf.mxu0 }
  0xc6   :  { %v184_v5 = vmul.f32 -1.442695, %v89_v4 }
  0xc7   :  { %v195_v6 = vpop.f32.mrf.mxu0 }
  0xc8   :  { %203 = vpow2.f32 %v184_v5 }
  0xd5   :  { %v204_v7 = vpop.eup %203 }
  0xd6   :  { %v96_v8 = vadd.f32 1.0, %v204_v7 }
  0xd8   :  { %205 = vrcp.f32 %v96_v8 }
  0xe5   :  { %v206_v9 = vpop.eup %205 }
  0xe6   :  { %199 = vmatmul.mubr.msk.f32.vlgmr.msra.gmra.mxu1 %vm16_vm0, %v206_v9 }
 0x1a6   :  { %v172_v10 = vpop.f32.mrf.mxu1 }
 0x1a7   :  { %177 = vst.msk [vmem:[%s248_s3] sm:$0xf] %vm176_vm2, %v172_v10 }
 0x1a8   :  { %v200_v11 = vpop.f32.mrf.mxu1 }

</bundles_post_ra>
